<compile_context>
chip_gen: v7x
topology: tpu7x:2x2x1
jax: 0.10.0
libtpu: 0.0.40
codegen_flags: <defaults>
</compile_context>

<pallas_src>
import jax
import jax.numpy as jnp
from jax.experimental import pallas as pl
from jax.experimental.pallas import tpu as pltpu


def _prelu_kernel(alpha_ref, x_ref, o_ref):
    # alpha_ref: (1,) f32 scalar in SMEM; x_ref/o_ref: (rows_block, L) VMEM tiles.
    x = x_ref[...]
    a = alpha_ref[0].astype(x.dtype)  # scalar cast once per step; 0.25 exact in bf16
    o_ref[...] = jnp.where(x >= 0, x, a * x)


def _round_up(v, m):
    return ((v + m - 1) // m) * m


def _choose_lane_width(n, max_lane_mult):
    # Widest lane dim (multiple of 128, up to max_lane_mult*128) dividing n.
    for k in range(max_lane_mult, 0, -1):
        if n % (128 * k) == 0:
            return 128 * k
    return 128


def _prelu_2d(x2d, alpha_f32, target_block_bytes, donate):
    """Run the PReLU kernel over a lane-dense (rows, lane_width) view."""
    rows, lane_width = x2d.shape
    dtype = x2d.dtype
    itemsize = jnp.dtype(dtype).itemsize
    # sublane packing granularity: 8 rows for 4-byte, 16 for 2-byte, 32 for 1-byte
    min_sub = max(8, 32 // itemsize)

    if rows <= min_sub:
        # Tiny tensor: single full-extent block (always legal).
        rows_block = rows
    else:
        # ~target_block_bytes per block, aligned to sublane packing ...
        rows_block = max(min_sub, target_block_bytes // (lane_width * itemsize))
        rows_block = (rows_block // min_sub) * min_sub
        # ... but never fewer than 2 grid steps (4 when rows allow), so the
        # software pipeline overlaps DMA/compute/writeback and v7x's two
        # TensorCores both get work via dimension_semantics=("parallel",).
        desired_steps = 4 if rows >= 4 * min_sub else 2
        cap = _round_up(pl.cdiv(rows, desired_steps), min_sub)
        rows_block = min(max(min_sub, min(rows_block, cap)), rows)

    n_blocks = pl.cdiv(rows, rows_block)

    block_bytes = rows_block * lane_width * itemsize
    # in + out, double-buffered (4x block) plus headroom; clamp to v7x's
    # 64 MiB physical VMEM (v5e/v6e have 128 MiB, so this is always safe).
    vmem_limit = min(64 * 1024 * 1024,
                     max(16 * 1024 * 1024, 4 * block_bytes + 4 * 1024 * 1024))

    n_kernel_elems = rows * lane_width
    cost = pl.CostEstimate(
        flops=2 * n_kernel_elems,            # compare + multiply per element
        transcendentals=0,
        bytes_accessed=2 * n_kernel_elems * itemsize,
    )

    return pl.pallas_call(
        _prelu_kernel,
        out_shape=jax.ShapeDtypeStruct((rows, lane_width), dtype),
        grid_spec=pltpu.PrefetchScalarGridSpec(
            num_scalar_prefetch=0,
            grid=(n_blocks,),
            in_specs=[
                pl.BlockSpec(memory_space=pltpu.MemorySpace.SMEM),          # alpha
                pl.BlockSpec((rows_block, lane_width), lambda i: (i, 0)),   # x tile
            ],
            out_specs=pl.BlockSpec((rows_block, lane_width), lambda i: (i, 0)),
        ),
        compiler_params=pltpu.CompilerParams(
            dimension_semantics=("parallel",),     # megacore sharding on v7x
            vmem_limit_bytes=vmem_limit,
        ),
        cost_estimate=cost,
        input_output_aliases=({1: 0} if donate else {}),
    )(alpha_f32, x2d)


def prelu_pallas(x, alpha, *, target_block_bytes=6 * 1024 * 1024,
                 max_lane_mult=16, donate_x=False):
    """Elementwise PReLU via a Pallas TPU kernel.

    x:        jnp array, any shape (treated as NCHW), float dtype.
    alpha:    scalar / (1,) array, the shared PReLU weight (kept in f32 SMEM).
    donate_x: if True, alias the input HBM buffer as the output (only when the
              caller actually donates x, otherwise XLA inserts a copy).
    """
    orig_shape = x.shape
    dtype = x.dtype
    if not jnp.issubdtype(dtype, jnp.floating):
        raise TypeError("prelu_pallas: floating-point input required")
    n_elem = int(x.size)
    if n_elem == 0:
        return x

    alpha_f32 = jnp.asarray(alpha, dtype=jnp.float32).reshape((1,))

    n_main = (n_elem // 128) * 128
    n_tail = n_elem - n_main

    if n_main == 0:
        # Fewer than 128 elements total: not worth a kernel launch.
        a = alpha_f32[0].astype(dtype)
        return jnp.where(x >= 0, x, a * x)

    if n_tail == 0:
        # Fast path: free (metadata-only) reshape; kernel is the only HBM traffic.
        lane_width = _choose_lane_width(n_elem, max_lane_mult)
        x2d = jnp.reshape(x, (n_elem // lane_width, lane_width))
        out2d = _prelu_2d(x2d, alpha_f32, target_block_bytes, donate_x)
        return jnp.reshape(out2d, orig_shape)

    # Slow path (size not a multiple of 128): kernel on the 128-aligned prefix,
    # plain jnp.where on the < 128-element tail; no full-tensor pad/slice passes.
    x_flat = jnp.reshape(x, (-1,))
    x_main = x_flat[:n_main]
    x_tail = x_flat[n_main:]

    lane_width = _choose_lane_width(n_main, max_lane_mult)
    out_main = _prelu_2d(jnp.reshape(x_main, (n_main // lane_width, lane_width)),
                         alpha_f32, target_block_bytes, donate_x)
    a = alpha_f32[0].astype(dtype)
    out_tail = jnp.where(x_tail >= 0, x_tail, a * x_tail)
    out_flat = jnp.concatenate([jnp.reshape(out_main, (-1,)), out_tail])
    return jnp.reshape(out_flat, orig_shape)


class ReluNodePallas:
    """JAX/Pallas mirror of dpsnn ReluNode (stateless functional forward)."""

    def __init__(self, no_spiking=False):
        self.no_spiking = no_spiking
        # PReLU default init in PyTorch: single shared parameter = 0.25
        self.alpha = jnp.array([0.25], dtype=jnp.float32)

    def __call__(self, x, time_step):
        # The original module's neuro-state bookkeeping only zero-inits a
        # buffer that is immediately overwritten; the output depends only on x.
        out = prelu_pallas(x, self.alpha)
        if self.no_spiking:
            return out
        return (out, None)


if __name__ == "__main__":
    key = jax.random.PRNGKey(0)
    alpha = jnp.array([0.25], dtype=jnp.float32)

    # --- main check: small NCHW input (fast path, size % 128 == 0) ----------
    x = jax.random.normal(key, (2, 4, 16, 16), dtype=jnp.float32)
    node = ReluNodePallas(no_spiking=False)
    out, aux = node(x, time_step=0)
    out = jax.block_until_ready(out)

    ref = jnp.where(x >= 0, x, 0.25 * x)
    assert aux is None
    assert out.shape == x.shape and out.dtype == x.dtype
    assert jnp.max(jnp.abs(out - ref)) < 1e-6

    # --- multi-block check with a partial (masked) last block ---------------
    k2 = jax.random.PRNGKey(1)
    x2 = jax.random.normal(k2, (5, 512), dtype=jnp.float32)  # 2560 elems -> 20 rows
    out2 = jax.block_until_ready(
        prelu_pallas(x2, alpha, target_block_bytes=4096, max_lane_mult=1)
    )
    ref2 = jnp.where(x2 >= 0, x2, 0.25 * x2)
    assert jnp.max(jnp.abs(out2 - ref2)) < 1e-6

    # --- >=4-block pipelined / megacore path ---------------------------------
    k4 = jax.random.PRNGKey(3)
    x4 = jax.random.normal(k4, (8, 64, 32, 32), dtype=jnp.float32)  # 2 MiB
    out4 = jax.block_until_ready(prelu_pallas(x4, alpha))
    ref4 = jnp.where(x4 >= 0, x4, 0.25 * x4)
    assert jnp.max(jnp.abs(out4 - ref4)) < 1e-6

    # --- slow path check (size not a multiple of 128): prefix + tiny tail ----
    k3 = jax.random.PRNGKey(2)
    x3 = jax.random.normal(k3, (2, 3, 7, 5), dtype=jnp.float32)  # 210 elems
    out3 = jax.block_until_ready(prelu_pallas(x3, alpha))
    ref3 = jnp.where(x3 >= 0, x3, 0.25 * x3)
    assert out3.shape == x3.shape
    assert jnp.max(jnp.abs(out3 - ref3)) < 1e-6

    print("KERNEL_OK")
</pallas_src>

<mosaic_0001>
module attributes {stable_mosaic.version = 11 : i64} {
  func.func @_prelu_kernel(%arg0: i32, %arg1: memref<1xf32, #tpu.memory_space<smem>>, %arg2: memref<1x2048xf32, #tpu.memory_space<vmem>>, %arg3: memref<1x2048xf32, #tpu.memory_space<vmem>>) attributes {dimension_semantics = [#tpu.dimension_semantics<parallel>], iteration_bounds = array<i64: 1>, scalar_prefetch = 0 : i64, scratch_operands = 0 : i64, tpu.core_type = #tpu.core_type<tc>, window_params = [{transform_indices = @transform_0, window_bounds = array<i64: 1>}, {transform_indices = @transform_1, window_bounds = array<i64: 1, 2048>}, {transform_indices = @transform_2, window_bounds = array<i64: 1, 2048>}]} {
    %c0 = arith.constant 0 : index
    %c0_0 = arith.constant 0 : index
    %0 = vector.load %arg2[%c0, %c0_0] : memref<1x2048xf32, #tpu.memory_space<vmem>>, vector<1x2048xf32>
    %c0_1 = arith.constant 0 : index
    %1 = memref.load %arg1[%c0_1] : memref<1xf32, #tpu.memory_space<smem>>
    %cst = arith.constant 0.000000e+00 : f32
    %2 = vector.broadcast %cst : f32 to vector<1x2048xf32>
    %3 = arith.cmpf oge, %0, %2 : vector<1x2048xf32>
    %4 = vector.broadcast %1 : f32 to vector<1x2048xf32>
    %5 = arith.mulf %4, %0 : vector<1x2048xf32>
    %6 = arith.select %3, %0, %5 : vector<1x2048xi1>, vector<1x2048xf32>
    %c0_2 = arith.constant 0 : index
    %c0_3 = arith.constant 0 : index
    %7 = vector.load %arg3[%c0_2, %c0_3] : memref<1x2048xf32, #tpu.memory_space<vmem>>, vector<1x2048xf32>
    tpu.vector_store %arg3[%c0_2, %c0_3], %6 {strides = array<i32>} : memref<1x2048xf32, #tpu.memory_space<vmem>>, vector<1x2048xf32>,
    return
  }
  func.func @transform_0(%arg0: i32) -> i32 {
    %c0_i32 = arith.constant 0 : i32
    %c0_i32_0 = arith.constant 0 : i32
    return %c0_i32 : i32
  }
  func.func @transform_1(%arg0: i32) -> (i32, i32) {
    %c0_i32 = arith.constant 0 : i32
    %c0_i32_0 = arith.constant 0 : i32
    return %arg0, %c0_i32 : i32, i32
  }
  func.func @transform_2(%arg0: i32) -> (i32, i32) {
    %c0_i32 = arith.constant 0 : i32
    %c0_i32_0 = arith.constant 0 : i32
    return %arg0, %c0_i32 : i32, i32
  }
}

</mosaic_0001>

<bundles_post_ra>
// kernel: tpu_custom_call.1
= control target key start
LH: loop header
LB: loop body
LE: loop exit
PB: predicated region body
PF: predicated region fallthrough
CT: control target
= control target key end

     0   :  { %8 = vsyncpa [#allocation4], 0  ;;  %s146_s0 = inlined_call_operand.<no memory space> [shape: f32[1], index: 0, kind: input, shape index: {}]   ;;  %s147_s1 = inlined_call_operand.hbm [shape: f32[1,2048], index: 1, kind: input, shape index: {}]   ;;  %s148_s2 = inlined_call_operand.hbm [shape: f32[1,2048], index: 2, kind: output, shape index: {}]  }
   0x1   :  { %9 = vsyncpa [#allocation5], 0  ;;  %s102_s9 = smov [#allocation3]   ;;  %s54_s13 = scalar_lea.hbm %s147_s1, 256 }
   0x2   :  { %s18_s10 = sshll.u32 %s102_s9, 4  ;;  %p55_p0 = scmp.ne.s32.totalorder %s147_s1, %s54_s13  ;;  %s19_s10 = int_to_ptr.vmem [resolvable:$true] %s18_s10 }
   0x3   :  { %p58_p1 = scmp.lt.u32.totalorder %s54_s13, %s147_s1 }
   0x5   :  { %p60_p2 = pnand %p58_p1, %p55_p0 }
   0x7   :  { %63 = shalt.err (!%p60_p2)
}
   0x8   :  { %s64_s18 = scalar_lea.vmem %s19_s10, 256  ;;  %p69_p4 = scmp.lt.s32.totalorder %s19_s10, %s19_s10 }
   0x9   :  { %p65_p3 = scmp.ne.s32.totalorder %s19_s10, %s64_s18  ;;  %p70_p5 = scmp.lt.s32.totalorder %s64_s18, %s64_s18 }
   0xb   :  { %p71_p6 = por %p70_p5, %p69_p4 }
   0xd   :  { %p72_p7 = pnand %p71_p6, %p65_p3 }
   0xf   :  { %75 = shalt.err (!%p72_p7)
}
  0x10   :  { %21 = dma.hbm_to_vmem [thread:$0]  %s147_s1, 256, %s19_s10, [#allocation4]  }
  0x11   :  { %98 = dma.done.wait [#allocation4], 256  }
  0x12   :  { %99 = vsyncadd [#allocation4], 4294967040  ;;  %v30_v0 = vstv %s146_s0  ;;  %s103_s23 = smov [#allocation6]   ;;  %v25_v1 = vld [vmem:[#allocation3] sm:$0xff]  ;;  %v26_v2 = vld [vmem:[#allocation3 + $0x8] sm:$0xff] }
  0x13   :  { %s43_s24 = sshll.u32 %s103_s23, 4  ;;  %vm28_vm0 = vcmp.ge.f32.partialorder %v25_v1, 0.0  ;;  %v31_v3 = vmul.f32 %v30_v0, %v25_v1  ;;  %vm29_vm1 = vcmp.ge.f32.partialorder %v26_v2, 0.0  ;;  %v32_v4 = vmul.f32 %v30_v0, %v26_v2  ;;  %s44_s24 = int_to_ptr.vmem [resolvable:$true] %s43_s24 }
  0x14   :  { %s76_s1 = scalar_lea.vmem %s44_s24, 256  ;;  %p81_p9 = scmp.lt.s32.totalorder %s44_s24, %s44_s24 }
  0x15   :  { %v33_v5 = vsel %vm28_vm0, %v25_v1, %v31_v3  ;;  %v34_v6 = vsel %vm29_vm1, %v26_v2, %v32_v4  ;;  %p77_p8 = scmp.ne.s32.totalorder %s44_s24, %s76_s1  ;;  %p82_p10 = scmp.lt.s32.totalorder %s76_s1, %s76_s1 }
  0x16   :  { %35 = vst [vmem:[#allocation6] sm:$0xff] %v33_v5  ;;  %36 = vst [vmem:[#allocation6 + $0x8] sm:$0xff] %v34_v6 }
  0x17   :  { %p83_p11 = por %p82_p10, %p81_p9 }
  0x19   :  { %p84_p12 = pnand %p83_p11, %p77_p8 }
  0x1b   :  { %87 = shalt.err (!%p84_p12)
}
  0x1c   :  { %s88_s26 = scalar_lea.hbm %s148_s2, 256 }
  0x1d   :  { %p89_p13 = scmp.ne.s32.totalorder %s148_s2, %s88_s26  ;;  %p92_p0 = scmp.lt.u32.totalorder %s88_s26, %s148_s2 }
  0x1f   :  { %p94_p1 = pnand %p92_p0, %p89_p13 }
  0x21   :  { %97 = shalt.err (!%p94_p1)
}
  0x22   :  { %46 = dma.vmem_to_hbm [thread:$0]  %s44_s24, 256, %s148_s2, [#allocation5]  }
  0x23   :  { %100 = dma.done.wait [#allocation5], 256  }
  0x24   :  { %101 = vsyncadd [#allocation5], 4294967040 }
  0x25   :  { %50 = vsyncpa [#allocation4], 1 }
  0x26   :  { %51 = vsyncpa [#allocation5], 1 }

</bundles_post_ra>
